<compile_context>
chip_gen: v5e
topology: v5e:2x2
jax: 0.10.0
libtpu: 0.0.40
codegen_flags: <defaults>
</compile_context>

<pallas_src>
import functools
import math

import jax
import jax.numpy as jnp
from jax import lax
from jax.experimental import pallas as pl
from jax.experimental.pallas import tpu as pltpu

LANE = 128


def _partials_kernel(p_ref, t_ref, out_ref, *, binary, nq):
    """Lane-dense per-row partial sums for one (row_block, col_tile) tile.

    Accumulates nq quantities into (rows, 128) f32 partials with pure VPU adds
    (no divides, no cross-lane reductions in the hot loop) and stores them as a
    single lane-dense, 128-aligned (rows, nq*128) block.
    """
    rows = p_ref.shape[0]
    n_lane_chunks = p_ref.shape[1] // LANE  # static: col_tile % 128 == 0

    def body(c, carry):
        off = pl.multiple_of(c * LANE, LANE)
        p = p_ref[:, pl.ds(off, LANE)].astype(jnp.float32)
        t = t_ref[:, pl.ds(off, LANE)].astype(jnp.float32)
        if binary:
            pt, pp, tt, bpos, bneg = carry
            pos = t > 0.5
            # Single clamped log: -log(p) on positives, -log(1-p) on negatives.
            lp = jnp.maximum(jnp.log(jnp.where(pos, p, 1.0 - p)), -100.0)
            return (pt + p * t,
                    pp + p * p,
                    tt + t,                       # t*t == t for {0,1} targets
                    bpos + jnp.where(pos, lp, 0.0),
                    bneg + jnp.where(pos, 0.0, lp))
        else:
            pt, pp, tt, bpos, bneg, cp, cn = carry
            # Exact F.binary_cross_entropy semantics (clamped two-log form,
            # correct for soft targets).  Signed: bce = -bce_s; negated once in
            # the JAX finalize (saves a multiply + negate per element).
            log_p = jnp.maximum(jnp.log(p), -100.0)
            log_q = jnp.maximum(jnp.log(1.0 - p), -100.0)
            bce_s = t * (log_p - log_q) + log_q
            pos = t > 0.5
            neg = t < 0.5
            return (pt + p * t,
                    pp + p * p,
                    tt + t * t,
                    bpos + jnp.where(pos, bce_s, 0.0),
                    bneg + jnp.where(neg, bce_s, 0.0),
                    cp + jnp.where(pos, 1.0, 0.0),
                    cn + jnp.where(neg, 1.0, 0.0))

    zero = jnp.zeros((rows, LANE), jnp.float32)
    # Bound vreg pressure: nq accumulators cost nq * rows/8 vregs.
    unroll = 8 if rows <= 8 else (4 if rows <= 16 else 2)
    acc = lax.fori_loop(0, n_lane_chunks, body, (zero,) * nq,
                        unroll=min(int(n_lane_chunks), unroll))

    # Lane-dense, 128-aligned (unmasked) stores of this chunk's partials.
    for q in range(nq):
        out_ref[:, q * LANE:(q + 1) * LANE] = acc[q]


def _fold_rows(B, N):
    """Pick k so R = B*k is a multiple of 8 (smallest such k dividing N)."""
    if B % 8 == 0:
        return 1
    k0 = 8 // math.gcd(B, 8)
    for mult in range(1, 257):
        cand = k0 * mult
        if N % cand == 0:
            return cand
    return 1  # fall back: R = B; block rows == full dim, so still no padding


def _pick_col_tile(main_cols, col_cap):
    """Largest 128-multiple dividing main_cols and <= col_cap.

    Prefers >= 2 grid chunks (megacore sharding on v7x), but never shrinks the
    tile by more than ~8x just to split.
    """
    m = main_cols // LANE
    max_d = max(1, min(col_cap // LANE, m))
    divs = [d for d in range(max_d, 0, -1) if m % d == 0]
    best = divs[0]
    if m // best < 2:
        for d in divs[1:]:
            if m // d >= 2 and d >= max(1, best // 8):
                best = d
                break
    return best * LANE


def _jax_partials(p, t, binary):
    """Plain-JAX per-row partial sums for the ragged (<128-column) tail."""
    p = p.astype(jnp.float32)
    t = t.astype(jnp.float32)
    if binary:
        pos = t > 0.5
        lp = jnp.maximum(jnp.log(jnp.where(pos, p, 1.0 - p)), -100.0)
        cols = (p * t, p * p, t,
                jnp.where(pos, lp, 0.0), jnp.where(pos, 0.0, lp))
    else:
        log_p = jnp.maximum(jnp.log(p), -100.0)
        log_q = jnp.maximum(jnp.log(1.0 - p), -100.0)
        bce_s = t * (log_p - log_q) + log_q
        pos = t > 0.5
        neg = t < 0.5
        cols = (p * t, p * p, t * t,
                jnp.where(pos, bce_s, 0.0), jnp.where(neg, bce_s, 0.0),
                jnp.where(pos, 1.0, 0.0), jnp.where(neg, 1.0, 0.0))
    return jnp.stack([c.sum(axis=-1) for c in cols], axis=-1)  # (R, nq)


def weighted_dice_bce(inputs, targets, *, dice_weight=0.7, bce_weight=0.3,
                      binary_targets=False):
    """WeightedDiceBCE forward.

    inputs:  probabilities in (0, 1) (as expected by F.binary_cross_entropy).
    targets: ground-truth mask; batch on axis 0.
    binary_targets=True enables a faster single-log path exact only for targets
    in {0, 1}; narrow target dtypes (bf16 / int8 / bool) cut HBM traffic and are
    upcast inside the kernel.  The default path stays exact for soft labels.
    """
    B = int(inputs.shape[0])
    N = int(math.prod(inputs.shape[1:])) if inputs.ndim > 1 else 1
    nq = 5 if binary_targets else 7

    # ---- layout: (B, N) -> (R, ncols), R a multiple of 8 where possible, no pads ----
    k = _fold_rows(B, N)
    R = B * k
    ncols = N // k

    p2 = inputs.reshape(R, ncols)
    if not jnp.issubdtype(p2.dtype, jnp.floating):
        p2 = p2.astype(jnp.float32)
    t2 = targets.reshape(R, ncols)
    if t2.dtype == jnp.bool_:
        t2 = t2.astype(jnp.int8)

    row_block = 8 if R % 8 == 0 else R            # pin rows/block to 8 (vreg pressure)
    nrow_blocks = R // row_block

    # ---- column tiling: 128-multiple tile dividing the 128-aligned prefix ----
    main_cols = (ncols // LANE) * LANE
    tail_cols = ncols - main_cols

    vmem_cap = 64 * 1024 * 1024
    try:  # generation-aware tile budget (v5e/v6e: 128 MiB VMEM; v7x-class: 64 MiB)
        vmem_cap = int(pltpu.get_tpu_info().vmem_capacity_bytes)
    except Exception:
        pass
    if vmem_cap >= 100 * 1024 * 1024:
        step_budget = 16 * 1024 * 1024            # both inputs, single buffer
        vmem_limit = 48 * 1024 * 1024             # 2x double-buffered inputs + headroom
    else:
        step_budget = 10 * 1024 * 1024            # double-buffered footprint <= ~24 MiB
        vmem_limit = 28 * 1024 * 1024
    bytes_per_col = row_block * (p2.dtype.itemsize + t2.dtype.itemsize)
    col_cap = max(LANE, (step_budget // bytes_per_col) // LANE * LANE)

    row_sums = jnp.zeros((R, nq), jnp.float32)
    if main_cols > 0:
        col_tile = _pick_col_tile(main_cols, col_cap)
        nchunks = main_cols // col_tile
        kernel = functools.partial(_partials_kernel, binary=binary_targets, nq=nq)
        partials = pl.pallas_call(
            kernel,
            out_shape=jax.ShapeDtypeStruct(
                (nrow_blocks, nchunks, row_block, nq * LANE), jnp.float32),
            grid_spec=pltpu.PrefetchScalarGridSpec(
                num_scalar_prefetch=0,
                grid=(nrow_blocks, nchunks),
                # The grid only touches the first nchunks*col_tile (== main_cols)
                # columns of the (R, ncols) arrays -- always in bounds, no padding.
                in_specs=[
                    pl.BlockSpec((row_block, col_tile), lambda i, j: (i, j)),
                    pl.BlockSpec((row_block, col_tile), lambda i, j: (i, j)),
                ],
                out_specs=pl.BlockSpec((None, None, row_block, nq * LANE),
                                       lambda i, j: (i, j, 0, 0)),
            ),
            compiler_params=pltpu.CompilerParams(
                dimension_semantics=("parallel", "parallel"),
                vmem_limit_bytes=vmem_limit,
            ),
        )(p2, t2)
        # (nrow_blocks, nchunks, row_block, nq*LANE) -> (R, nq)
        row_sums = (partials.sum(axis=1)
                    .reshape(R, nq, LANE)
                    .sum(axis=-1))

    if tail_cols > 0:  # ragged tail (< 128 columns per row) reduced in plain JAX
        row_sums = row_sums + _jax_partials(
            p2[:, main_cols:], t2[:, main_cols:], binary_targets)

    # ---- tiny finalize in plain JAX (all scalar normalization hoisted here) ----
    pt = row_sums[:, 0].reshape(B, k).sum(axis=-1)
    pp = row_sums[:, 1].reshape(B, k).sum(axis=-1)
    tt = row_sums[:, 2].reshape(B, k).sum(axis=-1)
    s_pos = -row_sums[:, 3].sum()        # signed accumulation -> negate once here
    s_neg = -row_sums[:, 4].sum()
    if binary_targets:
        pos_w = row_sums[:, 2].sum()     # sum(t) == sum(t*t) for {0,1} targets
        neg_w = float(B * N) - pos_w
    else:
        pos_w = row_sums[:, 5].sum()
        neg_w = row_sums[:, 6].sum()
    pos_w = pos_w + 1e-12
    neg_w = neg_w + 1e-12

    # WeightedBCE(weights=[0.5, 0.5])
    bce_loss = 0.5 * s_pos / pos_w + 0.5 * s_neg / neg_w
    # WeightedDiceLoss(weights=[0.5, 0.5]): w == 0.5 everywhere, folded into scalars
    intersection = 0.25 * pt
    union = 0.25 * (pp + tt)
    dice_loss = jnp.mean(1.0 - (2.0 * intersection + 1e-5) / (union + 1e-5))

    return dice_weight * dice_loss + bce_weight * bce_loss


def _reference(inputs, targets):
    """Pure-JAX reference mirroring the PyTorch WeightedDiceBCE module."""
    B = inputs.shape[0]
    p = inputs.reshape(-1).astype(jnp.float32)
    t = targets.reshape(-1).astype(jnp.float32)
    log_p = jnp.maximum(jnp.log(p), -100.0)
    log_q = jnp.maximum(jnp.log(1.0 - p), -100.0)
    bce = -(t * log_p + (1.0 - t) * log_q)
    pos = (t > 0.5).astype(jnp.float32)
    neg = (t < 0.5).astype(jnp.float32)
    bce_loss = jnp.sum(0.5 * pos * bce / (pos.sum() + 1e-12)
                       + 0.5 * neg * bce / (neg.sum() + 1e-12))
    pb = inputs.reshape(B, -1).astype(jnp.float32) * 0.5
    tb = targets.reshape(B, -1).astype(jnp.float32) * 0.5
    inter = jnp.sum(pb * tb, axis=-1)
    union = jnp.sum(pb * pb, axis=-1) + jnp.sum(tb * tb, axis=-1)
    dice_loss = jnp.mean(1.0 - (2.0 * inter + 1e-5) / (union + 1e-5))
    return 0.7 * dice_loss + 0.3 * bce_loss


if __name__ == "__main__":
    key = jax.random.PRNGKey(0)
    k1, k2 = jax.random.split(key)
    B, C, H, W = 2, 4, 16, 16
    # inputs: probabilities in (0, 1) as expected by F.binary_cross_entropy
    inputs = jax.nn.sigmoid(jax.random.normal(k1, (B, C, H, W), dtype=jnp.float32))
    # targets: binary ground-truth mask (float, matching typical PyTorch usage)
    targets = (jax.random.uniform(k2, (B, C, H, W)) > 0.5).astype(jnp.float32)

    ref = _reference(inputs, targets)

    # Default exact path (soft-label safe, two clamped logs).
    loss = jax.block_until_ready(weighted_dice_bce(inputs, targets))
    assert jnp.allclose(loss, ref, rtol=1e-5, atol=1e-6), (loss, ref)

    # Opt-in binary-target fast path carrying the mask in a narrow dtype:
    # single log, 5 accumulators, fewer HBM bytes per element (exact for {0,1}).
    loss_fast = jax.block_until_ready(
        weighted_dice_bce(inputs, targets.astype(jnp.bfloat16), binary_targets=True))
    assert jnp.allclose(loss_fast, ref, rtol=1e-5, atol=1e-6), (loss_fast, ref)

    print("KERNEL_OK")
</pallas_src>

<mosaic_0001>
module attributes {stable_mosaic.version = 11 : i64} {
  func.func @_partials_kernel(%arg0: i32, %arg1: i32, %arg2: memref<8x128xf32, #tpu.memory_space<vmem>>, %arg3: memref<8x128xf32, #tpu.memory_space<vmem>>, %arg4: memref<1x1x8x896xf32, #tpu.memory_space<vmem>>) attributes {dimension_semantics = [#tpu.dimension_semantics<parallel>, #tpu.dimension_semantics<parallel>], iteration_bounds = array<i64: 1, 2>, scalar_prefetch = 0 : i64, scratch_operands = 0 : i64, tpu.core_type = #tpu.core_type<tc>, window_params = [{transform_indices = @transform_0, window_bounds = array<i64: 8, 128>}, {transform_indices = @transform_1, window_bounds = array<i64: 8, 128>}, {transform_indices = @transform_2, window_bounds = array<i64: 1, 1, 8, 896>}]} {
    %cst = arith.constant 0.000000e+00 : f32
    %0 = vector.broadcast %cst : f32 to vector<8x128xf32>
    %c0_i32 = arith.constant 0 : i32
    %c128_i32 = arith.constant 128 : i32
    %1 = arith.muli %c0_i32, %c128_i32 : i32
    %2 = tpu.assume_multiple %1, 128 : i32
    %c0 = arith.constant 0 : index
    %3 = arith.index_cast %2 : i32 to index
    %4 = vector.load %arg2[%c0, %3] : memref<8x128xf32, #tpu.memory_space<vmem>>, vector<8x128xf32>
    %c0_0 = arith.constant 0 : index
    %5 = arith.index_cast %2 : i32 to index
    %6 = vector.load %arg3[%c0_0, %5] : memref<8x128xf32, #tpu.memory_space<vmem>>, vector<8x128xf32>
    %7 = math.log %4 : vector<8x128xf32>
    %cst_1 = arith.constant -1.000000e+02 : f32
    %8 = vector.broadcast %cst_1 : f32 to vector<8x128xf32>
    %9 = arith.maximumf %7, %8 : vector<8x128xf32>
    %cst_2 = arith.constant 1.000000e+00 : f32
    %10 = vector.broadcast %cst_2 : f32 to vector<8x128xf32>
    %11 = arith.subf %10, %4 : vector<8x128xf32>
    %12 = math.log %11 : vector<8x128xf32>
    %cst_3 = arith.constant -1.000000e+02 : f32
    %13 = vector.broadcast %cst_3 : f32 to vector<8x128xf32>
    %14 = arith.maximumf %12, %13 : vector<8x128xf32>
    %15 = arith.subf %9, %14 : vector<8x128xf32>
    %16 = arith.mulf %6, %15 : vector<8x128xf32>
    %17 = arith.addf %16, %14 : vector<8x128xf32>
    %cst_4 = arith.constant 5.000000e-01 : f32
    %18 = vector.broadcast %cst_4 : f32 to vector<8x128xf32>
    %19 = arith.cmpf ogt, %6, %18 : vector<8x128xf32>
    %cst_5 = arith.constant 5.000000e-01 : f32
    %20 = vector.broadcast %cst_5 : f32 to vector<8x128xf32>
    %21 = arith.cmpf olt, %6, %20 : vector<8x128xf32>
    %22 = arith.mulf %4, %6 : vector<8x128xf32>
    %23 = arith.addf %0, %22 : vector<8x128xf32>
    %24 = arith.mulf %4, %4 : vector<8x128xf32>
    %25 = arith.addf %0, %24 : vector<8x128xf32>
    %26 = arith.mulf %6, %6 : vector<8x128xf32>
    %27 = arith.addf %0, %26 : vector<8x128xf32>
    %cst_6 = arith.constant 0.000000e+00 : f32
    %28 = vector.broadcast %cst_6 : f32 to vector<8x128xf32>
    %29 = arith.select %19, %17, %28 : vector<8x128xi1>, vector<8x128xf32>
    %30 = arith.addf %0, %29 : vector<8x128xf32>
    %cst_7 = arith.constant 0.000000e+00 : f32
    %31 = vector.broadcast %cst_7 : f32 to vector<8x128xf32>
    %32 = arith.select %21, %17, %31 : vector<8x128xi1>, vector<8x128xf32>
    %33 = arith.addf %0, %32 : vector<8x128xf32>
    %cst_8 = arith.constant 1.000000e+00 : f32
    %cst_9 = arith.constant 0.000000e+00 : f32
    %34 = vector.broadcast %cst_8 : f32 to vector<8x128xf32>
    %35 = vector.broadcast %cst_9 : f32 to vector<8x128xf32>
    %36 = arith.select %19, %34, %35 : vector<8x128xi1>, vector<8x128xf32>
    %37 = arith.addf %0, %36 : vector<8x128xf32>
    %cst_10 = arith.constant 1.000000e+00 : f32
    %cst_11 = arith.constant 0.000000e+00 : f32
    %38 = vector.broadcast %cst_10 : f32 to vector<8x128xf32>
    %39 = vector.broadcast %cst_11 : f32 to vector<8x128xf32>
    %40 = arith.select %21, %38, %39 : vector<8x128xi1>, vector<8x128xf32>
    %41 = arith.addf %0, %40 : vector<8x128xf32>
    %c1_i32 = arith.constant 1 : i32
    %c0_12 = arith.constant 0 : index
    %c0_13 = arith.constant 0 : index
    %c0_14 = arith.constant 0 : index
    %c0_15 = arith.constant 0 : index
    %42 = vector.load %arg4[%c0_12, %c0_13, %c0_14, %c0_15] : memref<1x1x8x896xf32, #tpu.memory_space<vmem>>, vector<1x1x8x128xf32>
    %43 = vector.shape_cast %42 : vector<1x1x8x128xf32> to vector<8x128xf32>
    %44 = vector.shape_cast %23 : vector<8x128xf32> to vector<1x1x8x128xf32>
    tpu.vector_store %arg4[%c0_12, %c0_13, %c0_14, %c0_15], %44 {strides = array<i32>} : memref<1x1x8x896xf32, #tpu.memory_space<vmem>>, vector<1x1x8x128xf32>,
    %c0_16 = arith.constant 0 : index
    %c0_17 = arith.constant 0 : index
    %c0_18 = arith.constant 0 : index
    %c128 = arith.constant 128 : index
    %45 = vector.load %arg4[%c0_16, %c0_17, %c0_18, %c128] : memref<1x1x8x896xf32, #tpu.memory_space<vmem>>, vector<1x1x8x128xf32>
    %46 = vector.shape_cast %45 : vector<1x1x8x128xf32> to vector<8x128xf32>
    %47 = vector.shape_cast %25 : vector<8x128xf32> to vector<1x1x8x128xf32>
    tpu.vector_store %arg4[%c0_16, %c0_17, %c0_18, %c128], %47 {strides = array<i32>} : memref<1x1x8x896xf32, #tpu.memory_space<vmem>>, vector<1x1x8x128xf32>,
    %c0_19 = arith.constant 0 : index
    %c0_20 = arith.constant 0 : index
    %c0_21 = arith.constant 0 : index
    %c256 = arith.constant 256 : index
    %48 = vector.load %arg4[%c0_19, %c0_20, %c0_21, %c256] : memref<1x1x8x896xf32, #tpu.memory_space<vmem>>, vector<1x1x8x128xf32>
    %49 = vector.shape_cast %48 : vector<1x1x8x128xf32> to vector<8x128xf32>
    %50 = vector.shape_cast %27 : vector<8x128xf32> to vector<1x1x8x128xf32>
    tpu.vector_store %arg4[%c0_19, %c0_20, %c0_21, %c256], %50 {strides = array<i32>} : memref<1x1x8x896xf32, #tpu.memory_space<vmem>>, vector<1x1x8x128xf32>,
    %c0_22 = arith.constant 0 : index
    %c0_23 = arith.constant 0 : index
    %c0_24 = arith.constant 0 : index
    %c384 = arith.constant 384 : index
    %51 = vector.load %arg4[%c0_22, %c0_23, %c0_24, %c384] : memref<1x1x8x896xf32, #tpu.memory_space<vmem>>, vector<1x1x8x128xf32>
    %52 = vector.shape_cast %51 : vector<1x1x8x128xf32> to vector<8x128xf32>
    %53 = vector.shape_cast %30 : vector<8x128xf32> to vector<1x1x8x128xf32>
    tpu.vector_store %arg4[%c0_22, %c0_23, %c0_24, %c384], %53 {strides = array<i32>} : memref<1x1x8x896xf32, #tpu.memory_space<vmem>>, vector<1x1x8x128xf32>,
    %c0_25 = arith.constant 0 : index
    %c0_26 = arith.constant 0 : index
    %c0_27 = arith.constant 0 : index
    %c512 = arith.constant 512 : index
    %54 = vector.load %arg4[%c0_25, %c0_26, %c0_27, %c512] : memref<1x1x8x896xf32, #tpu.memory_space<vmem>>, vector<1x1x8x128xf32>
    %55 = vector.shape_cast %54 : vector<1x1x8x128xf32> to vector<8x128xf32>
    %56 = vector.shape_cast %33 : vector<8x128xf32> to vector<1x1x8x128xf32>
    tpu.vector_store %arg4[%c0_25, %c0_26, %c0_27, %c512], %56 {strides = array<i32>} : memref<1x1x8x896xf32, #tpu.memory_space<vmem>>, vector<1x1x8x128xf32>,
    %c0_28 = arith.constant 0 : index
    %c0_29 = arith.constant 0 : index
    %c0_30 = arith.constant 0 : index
    %c640 = arith.constant 640 : index
    %57 = vector.load %arg4[%c0_28, %c0_29, %c0_30, %c640] : memref<1x1x8x896xf32, #tpu.memory_space<vmem>>, vector<1x1x8x128xf32>
    %58 = vector.shape_cast %57 : vector<1x1x8x128xf32> to vector<8x128xf32>
    %59 = vector.shape_cast %37 : vector<8x128xf32> to vector<1x1x8x128xf32>
    tpu.vector_store %arg4[%c0_28, %c0_29, %c0_30, %c640], %59 {strides = array<i32>} : memref<1x1x8x896xf32, #tpu.memory_space<vmem>>, vector<1x1x8x128xf32>,
    %c0_31 = arith.constant 0 : index
    %c0_32 = arith.constant 0 : index
    %c0_33 = arith.constant 0 : index
    %c768 = arith.constant 768 : index
    %60 = vector.load %arg4[%c0_31, %c0_32, %c0_33, %c768] : memref<1x1x8x896xf32, #tpu.memory_space<vmem>>, vector<1x1x8x128xf32>
    %61 = vector.shape_cast %60 : vector<1x1x8x128xf32> to vector<8x128xf32>
    %62 = vector.shape_cast %41 : vector<8x128xf32> to vector<1x1x8x128xf32>
    tpu.vector_store %arg4[%c0_31, %c0_32, %c0_33, %c768], %62 {strides = array<i32>} : memref<1x1x8x896xf32, #tpu.memory_space<vmem>>, vector<1x1x8x128xf32>,
    return
  }
  func.func @transform_0(%arg0: i32, %arg1: i32) -> (i32, i32) {
    %c0_i32 = arith.constant 0 : i32
    return %arg0, %arg1 : i32, i32
  }
  func.func @transform_1(%arg0: i32, %arg1: i32) -> (i32, i32) {
    %c0_i32 = arith.constant 0 : i32
    return %arg0, %arg1 : i32, i32
  }
  func.func @transform_2(%arg0: i32, %arg1: i32) -> (i32, i32, i32, i32) {
    %c0_i32 = arith.constant 0 : i32
    %c0_i32_0 = arith.constant 0 : i32
    %c0_i32_1 = arith.constant 0 : i32
    return %arg0, %arg1, %c0_i32, %c0_i32_0 : i32, i32, i32, i32
  }
}

</mosaic_0001>

<bundles_post_ra>
// kernel: tpu_custom_call.1
= control target key start
LH: loop header
LB: loop body
LE: loop exit
PB: predicated region body
PF: predicated region fallthrough
CT: control target
= control target key end

     0   :  { %7 = vsyncpa [#allocation3], 0  ;;  %s769_s0 = inlined_call_operand.hbm [shape: f32[8,256], index: 0, kind: input, shape index: {}]   ;;  %s770_s1 = inlined_call_operand.hbm [shape: f32[8,256], index: 1, kind: input, shape index: {}]   ;;  %s771_s2 = inlined_call_operand.hbm [shape: f32[1,2,8,896], index: 2, kind: output, shape index: {}]  }
   0x1   :  { %9 = vsyncpa [#allocation3 + $0x1], 0 }
   0x2   :  { %10 = vsyncpa [#allocation6], 0 }
   0x3   :  { %12 = vsyncpa [#allocation6 + $0x1], 0 }
   0x4   :  { %13 = vsyncpa [#allocation4], 0 }
   0x5   :  { %15 = vsyncpa [#allocation4 + $0x1], 0  ;;  %s636_s9 = smov 0   ;;  %s638_s10 = smov 0  }
   0x6   :  { %s640_s11 = smov 0   ;;  %s642_s12 = smov 0  }
   0x7   :  { %s644_s13 = smov 0   ;;  %s646_s14 = smov 0  }
   0x8 LB: > { %s384_s15 = sadd.s32 4294967295, %s618_s14   ;;  %s385_s16 = sadd.s32 4294967294, %s618_s14   ;;  %s618_s14 = sphi %s646_s14, %s21_s14   ;;  %s614_s13 = sphi %s644_s13, %s780_s13   ;;  %s610_s12 = sphi %s642_s12, %s779_s12   ;;  %s606_s11 = sphi %s640_s11, %s778_s11   ;;  %s602_s10 = sphi %s638_s10, %s777_s10   ;;  %s598_s9 = sphi %s636_s9, %s776_s9  }
   0x9   : > { %s30_s17 = sadd.s32 1, %s614_s13  ;;  %s42_s18 = sadd.s32 1, %s606_s11 }
   0xa   : > { %p31_p0 = scmp.ge.s32.totalorder %s30_s17, 2  ;;  %p49_p1 = scmp.ne.s32.totalorder %s606_s11, %s602_s10 }
   0xb   : > { %p50_p2 = scmp.eq.s32.totalorder %s618_s14, 0  ;;  %p55_p3 = scmp.ne.s32.totalorder %s602_s10, %s598_s9 }
   0xc   : > { %s782_s17 = smov (%p31_p0, %s30_s17), 0  ;;  %p56_p5 = scmp.eq.s32.totalorder %s384_s15, 0 }
   0xd   : > { %p677_p4 = por %p50_p2, %p49_p1  ;;  %s38_s20 = ssub.s32 %s614_s13, %s782_s17 }
   0xe   : > { %p109_p6 = scmp.eq.s32.totalorder %s384_s15, 1  ;;  %p40_p7 = scmp.eq.s32.totalorder %s38_s20, 0 }
   0xf   : > { %p683_p8 = por %p56_p5, %p55_p3  ;;  %p115_p10 = scmp.eq.s32.totalorder %s385_s16, 1 }
  0x10   : > { %p687_p9 = por %p109_p6, %p49_p1  ;;  %p387_p12 = scmp.ge.s32.totalorder %s618_s14, 2 }
  0x11   : > { %s692_s23 = scalar_select %p40_p7, %s606_s11, %s42_s18  }
  0x12   : > { %p694_p11 = por %p115_p10, %p55_p3  ;;  %p417_p13 = scmp.lt.s32.totalorder %s618_s14, 2 }
  0x13   : > { %s135_s25 = sand.u32 1, %s606_s11   ;;  %s389_s27 = sshll.u32 %s614_s13, 3 }
  0x14   : > { %s388_s26 = sshll.u32 %s135_s25, 3  ;;  %s145_s30 = scalar_lea.hbm %s769_s0, %s389_s27 }
  0x15   : > { %s139_s3 = scalar_lea.vmem [#allocation2], %s388_s26  ;;  %s147_s5 = sshll.u32 %s145_s30, 4  ;;  %s148_s5 = int_to_ptr.hbm [resolvable:$true] %s147_s5 }
  0x16   : > { %s149_s4 = sshll.u32 %s139_s3, 4  ;;  %p407_p0 = pnand %p417_p13, %p677_p4  ;;  %s150_s4 = int_to_ptr.vmem [resolvable:$true] %s149_s4 }
  0x17   : > { %p392_p1 = scmp.ge.s32.totalorder %s618_s14, 1  ;;  %p175_p2 = scmp.lt.s32.totalorder %s618_s14, 3 }
  0x18   : > { %s136_s6 = scalar_lea.sflag [#allocation3], %s135_s25  ;;  %s166_s15 = scalar_lea.hbm %s770_s1, %s389_s27 }
  0x19   : > { %409 = dma.hbm_to_vmem [thread:$0]  (!%p407_p0), %s148_s5, 128, %s150_s4, %s136_s6  }
  0x1a   : > { %p176_p3 = pnand %p392_p1, %p175_p2  ;;  %s160_s16 = scalar_lea.vmem [#allocation5], %s388_s26 }
  0x1b   : > { %s170_s18 = sshll.u32 %s160_s16, 4  ;;  %s168_s20 = sshll.u32 %s166_s15, 4  ;;  %s171_s18 = int_to_ptr.vmem [resolvable:$true] %s170_s18  ;;  %s169_s20 = int_to_ptr.hbm [resolvable:$true] %s168_s20 }
  0x1c   : > { %s157_s28 = scalar_lea.sflag [#allocation6], %s135_s25  ;;  %179 = sbr.rel (%p176_p3) target bundleno = 62 (0x3e), region = 28 }
  0x1d   : > { %412 = dma.hbm_to_vmem [thread:$0]  (!%p407_p0), %s169_s20, 128, %s171_s18, %s157_s28  }
  0x1e   : > { %s713_s19 = sand.u32 (!%p176_p3), 1, %s602_s10  }
  0x1f   : > { %s393_s29 = sshll.u32 (!%p176_p3), %s713_s19, 3  ;;  %s182_s30 = scalar_lea.sflag (!%p176_p3), [#allocation3], %s713_s19 }
  0x20   : > { %s185_s3 = scalar_lea.vmem (!%p176_p3), [#allocation2], %s393_s29 }
  0x21   : > { %585 = dma.done.wait (%p683_p8), %s182_s30, 128  }
  0x22   : > { %587 = vsyncadd (%p683_p8), %s182_s30, 4294967168  ;;  %s192_s26 = scalar_lea.sflag [#allocation6], %s713_s19  ;;  %s195_s25 = scalar_lea.vmem [#allocation5], %s393_s29 }
  0x23   : > { %589 = dma.done.wait (%p683_p8), %s192_s26, 128  }
  0x24   : > { %591 = vsyncadd (%p683_p8), %s192_s26, 4294967168  ;;  %s398_s27 = smul.u32 56, %s713_s19  ;;  %v222_v0 = vld [vmem:[%s185_s3] sm:$0xff]  ;;  %v223_v1 = vld [vmem:[%s195_s25] sm:$0xff]  ;;  %v620_v6 = vmov 0.0   ;;  %s552_s29 = scalar_lea.hbm %s771_s2, 112 }
  0x25   : > { %v236_v2 = vmul.f32 %v223_v1, %v222_v0  ;;  %v238_v3 = vmul.f32 %v222_v0, %v222_v0  ;;  %v240_v4 = vmul.f32 %v223_v1, %v223_v1  ;;  %468 = vlog2.f32 %v222_v0  ;;  %s399_s21 = smul.u32 56, %s610_s12  ;;  %s258_s12 = scalar_lea.sflag [#allocation4], %s713_s19 }
  0x26   : > { %v227_v5 = vsub.f32 1.0, %v222_v0  ;;  %vm234_vm0 = vcmp.gt.f32.partialorder %v223_v1, 0.5  ;;  %vm235_vm1 = vcmp.lt.f32.partialorder %v223_v1, 0.5  ;;  %s221_s4 = scalar_lea.vmem [#allocation7], %s398_s27 }
  0x27   : > { %250 = vst [vmem:[%s221_s4] sm:$0xff] %v236_v2  ;;  %v246_v7 = vsel %vm234_vm0, 1.0, %v620_v6  ;;  %v248_v8 = vsel %vm235_vm1, 1.0, %v620_v6  ;;  %s271_s7 = scalar_lea.hbm %s771_s2, %s399_s21  ;;  %s273_s8 = sshll.u32 %s221_s4, 4  ;;  %s274_s8 = int_to_ptr.vmem [resolvable:$true] %s273_s8 }
  0x28   : > { %251 = vst [vmem:[%s221_s4 + $0x8] sm:$0xff] %v238_v3  ;;  %470 = vlog2.f32 %v227_v5  ;;  %s275_s15 = sshll.u32 %s271_s7, 4  ;;  %s276_s15 = int_to_ptr.hbm [resolvable:$true] %s275_s15 }
  0x29   : > { %252 = vst [vmem:[%s221_s4 + $0x10] sm:$0xff] %v240_v4  ;;  %s546_s16 = sshra.s32 %s276_s15, 4  ;;  %s547_s16 = int_to_ptr.hbm [resolvable:$true] %s546_s16 }
  0x2a   : > { %255 = vst [vmem:[%s221_s4 + $0x28] sm:$0xff] %v246_v7  ;;  %s548_s18 = scalar_lea.hbm %s547_s16, 56  ;;  %p553_p7 = scmp.lt.s32.totalorder %s547_s16, %s771_s2 }
  0x2b   : > { %v469_v9 = vpop.eup %468  ;;  %256 = vst [vmem:[%s221_s4 + $0x30] sm:$0xff] %v248_v8  ;;  %p549_p4 = scmp.ne.s32.totalorder %s547_s16, %s548_s18  ;;  %p554_p8 = scmp.lt.s32.totalorder %s552_s29, %s548_s18 }
  0x2c   : > { %v225_v10 = vmul.f32 0.6931472, %v469_v9 }
  0x2d   : > { %p550_p5 = pnand %p549_p4, %p687_p9  ;;  %p555_p10 = por %p554_p8, %p553_p7 }
  0x2e   : > { %v471_v11 = vpop.eup %470  ;;  %v226_v12 = vmax.f32 %v225_v10, -100.0 }
  0x2f   : > { %v229_v13 = vmul.f32 0.6931472, %v471_v11  ;;  %p551_p6 = pneg %p550_p5 }
  0x31   : > { %v230_v14 = vmax.f32 %v229_v13, -100.0  ;;  %p556_p13 = pnand %p555_p10, %p551_p6 }
  0x33   : > { %v231_v15 = vsub.f32 %v226_v12, %v230_v14 }
  0x35   : > { %v232_v16 = vmul.f32 %v231_v15, %v223_v1 }
  0x37   : > { %v233_v17 = vadd.f32 %v232_v16, %v230_v14 }
  0x39   : > { %v242_v18 = vsel %vm234_vm0, %v233_v17, 0.0  ;;  %v244_v19 = vsel %vm235_vm1, %v233_v17, 0.0 }
  0x3a   : > { %253 = vst [vmem:[%s221_s4 + $0x18] sm:$0xff] %v242_v18 }
  0x3b   : > { %254 = vst [vmem:[%s221_s4 + $0x20] sm:$0xff] %v244_v19 }
  0x3c   : > { %559 = shalt.err (!%p556_p13)
}
  0x3d   : > { %404 = dma.vmem_to_hbm [thread:$0]  (%p687_p9), %s274_s8, 896, %s276_s15, %s258_s12  }
  0x3e PF: > { %s287_s19 = sand.u32 1, %s598_s9   ;;  %p414_p0 = pnand %p387_p12, %p694_p11 }
  0x3f   : > { %s288_s26 = scalar_lea.sflag [#allocation4], %s287_s19 }
  0x40   : > { %p415_p1 = pneg %p414_p0 }
  0x42   : > { %593 = dma.done.wait (%p415_p1), %s288_s26, 896  }
  0x43   : > { %595 = vsyncadd (%p415_p1), %s288_s26, 4294966400  ;;  %s21_s14 = sadd.s32 1, %s618_s14   ;;  %s776_s9 = smov %s602_s10 }
  0x44   : > { %p18_p2 = scmp.ge.s32.totalorder %s21_s14, 4   ;;  %s777_s10 = smov %s606_s11 }
  0x45   : > { %s778_s11 = smov %s692_s23  ;;  %s779_s12 = smov %s614_s13 }
  0x46   : > { %s780_s13 = smov %s782_s17  ;;  %20 = sbr.rel (!%p18_p2) target bundleno = 8 (0x8), region = 86 }
  0x4b   :  { %294 = vsyncpa [#allocation3], 1 }
  0x4c   :  { %296 = vsyncpa [#allocation3 + $0x1], 1 }
  0x4d   :  { %297 = vsyncpa [#allocation6], 1 }
  0x4e   :  { %299 = vsyncpa [#allocation6 + $0x1], 1 }
  0x4f   :  { %300 = vsyncpa [#allocation4], 1 }
  0x50   :  { %302 = vsyncpa [#allocation4 + $0x1], 1 }

</bundles_post_ra>
